<compile_context>
chip_gen: v5e
topology: v5e:2x2
jax: 0.10.0
libtpu: 0.0.40
codegen_flags: <defaults>
</compile_context>

<pallas_src>
import jax
import jax.numpy as jnp
from jax.experimental import pallas as pl
from jax.experimental.pallas import tpu as pltpu


CPAD = 32  # conv output channels (25) zero-padded to one full sublane group


# --------------------------- VMEM budget / tiling ---------------------------

def _vmem_budget_bytes():
    """~3/4 of physical VMEM per generation (v5e/v6e: 96 MiB, v7x: 48 MiB);
    conservative 48 MiB fallback if the query is unavailable."""
    try:
        cap = int(pltpu.get_tpu_info().vmem_capacity_bytes)
    except Exception:
        cap = 64 * 1024 * 1024
    return cap * 3 // 4


_VMEM_BUDGET = _vmem_budget_bytes()


def _pick_tile_k(k_total, mid_blk, vmem_budget):
    """Largest divisor of k_total that is a multiple of 128 and whose
    double-buffered bf16 fc1 weight block stays under ~1/3 of the budget."""
    cap = max(128, vmem_budget // (12 * mid_blk))   # 2 bufs * tile_k*mid_blk*2B
    best = 0
    d = 128
    while d <= k_total:
        if k_total % d == 0 and d <= cap:
            best = d
        d += 128
    return best if best else k_total  # full-extent block is always legal


# ------------------------------ Pallas kernels ------------------------------

def _norm_conv1x1_kernel(v_ref, wt_ref, o_ref):
    # One image in NCHW layout: v_ref (Cin, HW) f32, channels on sublanes.
    # Per-pixel channel L2 normalization (reduce over sublanes, XLU) fused with
    # the 1x1 conv (bias=False) as a bf16 MXU matmul: out = W (Cout_pad,Cin) @ vn.
    v = v_ref[...]                                            # (Cin, HW) f32
    ss = jnp.sum(v * v, axis=0, keepdims=True)                # (1, HW) f32
    inv = 1.0 / (jnp.sqrt(ss) + 1e-8)                         # exact, as in torch
    vn = (v * inv).astype(jnp.bfloat16)
    o_ref[...] = jnp.dot(wt_ref[...], vn,
                         preferred_element_type=jnp.float32).astype(o_ref.dtype)


def _classifier_kernel(xv_ref, q_ref, w1v_ref, w1q_ref, b1_ref, h_ref, acc_ref):
    # Grid (mid-block j [parallel], K-block k [arbitrary]).
    # fc1 over the padded channel-major vision features is K-tiled into an f32
    # VMEM accumulator; the q branch (L2 norm + q @ W1q), bias and ReLU live in
    # the last-K epilogue. fc2+sigmoid (trivial GEMV) are done outside.
    k = pl.program_id(1)

    @pl.when(k == 0)
    def _():
        acc_ref[...] = jnp.zeros_like(acc_ref)

    acc_ref[...] += jnp.dot(xv_ref[...], w1v_ref[...],
                            preferred_element_type=jnp.float32)

    @pl.when(k == pl.num_programs(1) - 1)
    def _():
        q = q_ref[...].astype(jnp.float32)
        ss = jnp.sum(q * q, axis=-1, keepdims=True)
        inv = 1.0 / (jnp.sqrt(ss) + 1e-8)
        qn = (q * inv).astype(jnp.bfloat16)
        hidden = (acc_ref[...]
                  + jnp.dot(qn, w1q_ref[...], preferred_element_type=jnp.float32)
                  + b1_ref[...])
        h_ref[...] = jnp.maximum(hidden, 0.0)


# -------------------------------- wrappers ----------------------------------

def norm_conv1x1(v3d, wt_pad):
    """v3d: (N, Cin, H*W) f32 (a free reshape of NCHW); wt_pad: (CPAD, Cin) bf16.
    Returns (N, CPAD, H*W) bf16 in torch-flatten (channel-major) order."""
    n, cin, hw = v3d.shape
    cpad = wt_pad.shape[0]
    return pl.pallas_call(
        _norm_conv1x1_kernel,
        out_shape=jax.ShapeDtypeStruct((n, cpad, hw), jnp.bfloat16),
        grid_spec=pltpu.PrefetchScalarGridSpec(
            num_scalar_prefetch=0,
            grid=(n,),
            in_specs=[pl.BlockSpec((None, cin, hw), lambda b: (b, 0, 0)),
                      pl.BlockSpec((cpad, cin), lambda b: (0, 0))],
            out_specs=pl.BlockSpec((None, cpad, hw), lambda b: (b, 0, 0))),
        compiler_params=pltpu.CompilerParams(
            dimension_semantics=("parallel",),
            vmem_limit_bytes=_VMEM_BUDGET),
    )(v3d, wt_pad)


def classifier_hidden(x_v, q, w1v, w1q, b1):
    """Fused fc1 (split v/q blocks) + q L2-norm + ReLU. Returns (N, mid) f32."""
    n, k_total = x_v.shape
    hid = q.shape[1]
    mid = w1v.shape[1]
    # Split the fc1 output dim into 2 "parallel" blocks when it is wide enough:
    # on v7x both TensorCores then stream disjoint halves of the weight matrix.
    n_mid = 2 if mid % 256 == 0 else 1
    mid_blk = mid // n_mid
    tile_k = _pick_tile_k(k_total, mid_blk, _VMEM_BUDGET)
    grid = (n_mid, k_total // tile_k)
    return pl.pallas_call(
        _classifier_kernel,
        out_shape=jax.ShapeDtypeStruct((n, mid), jnp.float32),
        grid_spec=pltpu.PrefetchScalarGridSpec(
            num_scalar_prefetch=0,
            grid=grid,
            in_specs=[pl.BlockSpec((n, tile_k), lambda j, k: (0, k)),
                      pl.BlockSpec((n, hid), lambda j, k: (0, 0)),
                      pl.BlockSpec((tile_k, mid_blk), lambda j, k: (k, j)),
                      pl.BlockSpec((hid, mid_blk), lambda j, k: (0, j)),
                      pl.BlockSpec((1, mid_blk), lambda j, k: (0, j))],
            out_specs=pl.BlockSpec((n, mid_blk), lambda j, k: (0, j)),
            scratch_shapes=[pltpu.VMEM((n, mid_blk), jnp.float32)]),
        compiler_params=pltpu.CompilerParams(
            dimension_semantics=("parallel", "arbitrary"),
            vmem_limit_bytes=_VMEM_BUDGET),
    )(x_v, q, w1v, w1q, b1)


# --------------------------------- model ------------------------------------

def xavier_uniform(key, shape, fan_in, fan_out):
    bound = (6.0 / (fan_in + fan_out)) ** 0.5
    return jax.random.uniform(key, shape, jnp.float32, -bound, bound)


def pad_fc1_v(w1v_canon, cout, hw, cpad):
    """One-time init pad: fc1's v-rows are in torch flatten order (c, y, x);
    zero-pad the channel axis 25 -> CPAD so they line up with the padded conv
    output. No transpose needed (conv output stays channel-major)."""
    mid = w1v_canon.shape[1]
    w = w1v_canon.reshape(cout, hw, mid)
    w = jnp.pad(w, ((0, cpad - cout), (0, 0), (0, 0)))
    return w.reshape(cpad * hw, mid)


def simple_net_forward(params, v, input_ids, token_type_ids, attention_mask):
    # TODO(synk): stand-in for the pretrained encoder's pooled output `q`
    # (BERT-like encoder not reproduced here).
    del token_type_ids
    emb = params["stub_emb"][input_ids]                          # (N, S, HIDDEN)
    mask = attention_mask.astype(jnp.float32)[..., None]
    q = jnp.tanh(jnp.sum(emb * mask, axis=1) /
                 jnp.maximum(jnp.sum(mask, axis=1), 1.0))        # (N, HIDDEN) f32

    n, c, h, w = v.shape
    v3d = v.reshape(n, c, h * w)                                 # NCHW kept: free
    v_out = norm_conv1x1(v3d, params["conv1_wt_pad"])            # (N, CPAD, HW) bf16
    x_v = v_out.reshape(n, v_out.shape[1] * v_out.shape[2])      # contiguous, free

    hidden = classifier_hidden(x_v, q,
                               params["fc1_wv"], params["fc1_wq"],
                               params["fc1_b"])                  # (N, mid) f32
    logits = hidden @ params["fc2_w"] + params["fc2_b"]          # tiny GEMV
    return jax.nn.sigmoid(logits)


def reference_forward(ref, v, input_ids, token_type_ids, attention_mask):
    """Pure-JAX f32 reference of the torch forward (with the same q stub)."""
    del token_type_ids
    emb = ref["stub_emb"][input_ids]
    mask = attention_mask.astype(jnp.float32)[..., None]
    q = jnp.tanh(jnp.sum(emb * mask, axis=1) /
                 jnp.maximum(jnp.sum(mask, axis=1), 1.0))
    qn = q / (jnp.linalg.norm(q, axis=1, keepdims=True) + 1e-8)
    vn = v / (jnp.linalg.norm(v, axis=1, keepdims=True) + 1e-8)
    conv = jnp.einsum('oc,nchw->nohw', ref["conv1_w"], vn)
    v_flat = conv.reshape(v.shape[0], -1)
    combined = jnp.concatenate([v_flat, qn], axis=1)
    hid = jnp.maximum(combined @ ref["fc1_w"] + ref["fc1_b"], 0.0)
    return jax.nn.sigmoid(hid @ ref["fc2_w"] + ref["fc2_b"])


if __name__ == "__main__":
    # Scaled-down shapes consistent with the module:
    #   v: (N, Cin, H, W)   [2048 -> 64 channels, 14 -> 8 spatial]
    #   conv1: Conv2d(Cin, 25, 1, bias=False)
    #   hidden_size: 768 -> 32; classifier mid: 1024 -> 128; out: 1
    N, C_IN, H, W = 2, 64, 8, 8
    C_MID = 25
    HIDDEN = 32
    SEQ = 8
    VOCAB = 100
    CLS_MID = 128
    HW = H * W
    V_SIZE = C_MID * HW
    IN_F = HIDDEN + V_SIZE

    key = jax.random.PRNGKey(0)
    k = jax.random.split(key, 8)

    # Canonical (torch-ordered) weights, then the one-time perf reshuffle.
    conv1_w = xavier_uniform(k[0], (C_MID, C_IN), fan_in=C_IN, fan_out=C_MID)
    fc1_w = xavier_uniform(k[1], (IN_F, CLS_MID), fan_in=IN_F, fan_out=CLS_MID)
    fc2_w = xavier_uniform(k[2], (CLS_MID, 1), fan_in=CLS_MID, fan_out=1)
    w1v_canon, w1q = fc1_w[:V_SIZE], fc1_w[V_SIZE:]
    stub_emb = 0.02 * jax.random.normal(k[3], (VOCAB, HIDDEN), jnp.float32)

    params = {
        # conv1.weight (Cout, Cin, 1, 1) squeezed to (Cout, Cin), zero-padded
        # to CPAD=32 output channels; matmuls run in bf16 (f32 accum).
        "conv1_wt_pad": jnp.pad(conv1_w,
                                ((0, CPAD - C_MID), (0, 0))).astype(jnp.bfloat16),
        "fc1_wv": pad_fc1_v(w1v_canon, C_MID, HW, CPAD).astype(jnp.bfloat16),
        "fc1_wq": w1q.astype(jnp.bfloat16),
        "fc1_b": jnp.zeros((1, CLS_MID), jnp.float32),
        "fc2_w": fc2_w,
        "fc2_b": jnp.zeros((1, 1), jnp.float32),
        "stub_emb": stub_emb,
    }
    ref_params = {
        "conv1_w": conv1_w, "fc1_w": fc1_w,
        "fc1_b": jnp.zeros((CLS_MID,), jnp.float32),
        "fc2_w": fc2_w, "fc2_b": jnp.zeros((1,), jnp.float32),
        "stub_emb": stub_emb,
    }

    v = jax.random.normal(k[4], (N, C_IN, H, W), jnp.float32)
    input_ids = jax.random.randint(k[5], (N, SEQ), 0, VOCAB)
    token_type_ids = jnp.zeros((N, SEQ), jnp.int32)
    attention_mask = jnp.ones((N, SEQ), jnp.int32)

    fwd = jax.jit(simple_net_forward)
    probs = jax.block_until_ready(
        fwd(params, v, input_ids, token_type_ids, attention_mask))
    assert probs.shape == (N, 1)
    assert bool(jnp.all((probs >= 0.0) & (probs <= 1.0)))

    expected = reference_forward(ref_params, v, input_ids, token_type_ids,
                                 attention_mask)
    assert bool(jnp.max(jnp.abs(probs - expected)) < 5e-2), (
        "mismatch vs pure-JAX reference")

    print("KERNEL_OK")
</pallas_src>

<mosaic_0001>
module attributes {stable_mosaic.version = 11 : i64} {
  func.func @_norm_conv1x1_kernel(%arg0: i32, %arg1: memref<1x64x64xf32, #tpu.memory_space<vmem>>, %arg2: memref<32x64xbf16, #tpu.memory_space<vmem>>, %arg3: memref<1x32x64xbf16, #tpu.memory_space<vmem>>) attributes {dimension_semantics = [#tpu.dimension_semantics<parallel>], iteration_bounds = array<i64: 2>, scalar_prefetch = 0 : i64, scratch_operands = 0 : i64, tpu.core_type = #tpu.core_type<tc>, window_params = [{transform_indices = @transform_0, window_bounds = array<i64: 1, 64, 64>}, {pipeline_mode = #tpu.pipeline_mode<synchronous>, transform_indices = @transform_1, window_bounds = array<i64: 32, 64>}, {transform_indices = @transform_2, window_bounds = array<i64: 1, 32, 64>}]} {
    %c0 = arith.constant 0 : index
    %c0_0 = arith.constant 0 : index
    %c0_1 = arith.constant 0 : index
    %0 = vector.load %arg1[%c0, %c0_0, %c0_1] : memref<1x64x64xf32, #tpu.memory_space<vmem>>, vector<1x64x64xf32>
    %1 = vector.shape_cast %0 : vector<1x64x64xf32> to vector<64x64xf32>
    %2 = arith.mulf %1, %1 : vector<64x64xf32>
    %cst = arith.constant dense<0.000000e+00> : vector<64xf32>
    %3 = vector.multi_reduction <add>, %2, %cst [0] : vector<64x64xf32> to vector<64xf32>
    %4 = vector.shape_cast %3 : vector<64xf32> to vector<1x64xf32>
    %5 = math.sqrt %4 : vector<1x64xf32>
    %cst_2 = arith.constant 9.99999993E-9 : f32
    %6 = vector.broadcast %cst_2 : f32 to vector<1x64xf32>
    %7 = arith.addf %5, %6 : vector<1x64xf32>
    %cst_3 = arith.constant 1.000000e+00 : f32
    %8 = vector.broadcast %cst_3 : f32 to vector<1x64xf32>
    %9 = arith.divf %8, %7 : vector<1x64xf32>
    %10 = vector.broadcast %9 : vector<1x64xf32> to vector<64x64xf32>
    %11 = arith.mulf %1, %10 : vector<64x64xf32>
    %12 = arith.truncf %11 : vector<64x64xf32> to vector<64x64xbf16>
    %c0_4 = arith.constant 0 : index
    %c0_5 = arith.constant 0 : index
    %13 = vector.load %arg2[%c0_4, %c0_5] : memref<32x64xbf16, #tpu.memory_space<vmem>>, vector<32x64xbf16>
    %cst_6 = arith.constant dense<0.000000e+00> : vector<32x64xf32>
    %14 = tpu.matmul %13, %12, %cst_6 {dimension_numbers = #tpu.dot_dimension_numbers<[1], [0], [0], [1], [0, 0, 1, 1], [], []>} : vector<32x64xbf16>, vector<64x64xbf16>, vector<32x64xf32> -> vector<32x64xf32>
    %15 = arith.truncf %14 : vector<32x64xf32> to vector<32x64xbf16>
    %c0_7 = arith.constant 0 : index
    %c0_8 = arith.constant 0 : index
    %c0_9 = arith.constant 0 : index
    %16 = vector.load %arg3[%c0_7, %c0_8, %c0_9] : memref<1x32x64xbf16, #tpu.memory_space<vmem>>, vector<1x32x64xbf16>
    %17 = vector.shape_cast %16 : vector<1x32x64xbf16> to vector<32x64xbf16>
    %18 = vector.shape_cast %15 : vector<32x64xbf16> to vector<1x32x64xbf16>
    tpu.vector_store %arg3[%c0_7, %c0_8, %c0_9], %18 {strides = array<i32>} : memref<1x32x64xbf16, #tpu.memory_space<vmem>>, vector<1x32x64xbf16>,
    return
  }
  func.func @transform_0(%arg0: i32) -> (i32, i32, i32) {
    %c0_i32 = arith.constant 0 : i32
    %c0_i32_0 = arith.constant 0 : i32
    %c0_i32_1 = arith.constant 0 : i32
    return %arg0, %c0_i32, %c0_i32_0 : i32, i32, i32
  }
  func.func @transform_1(%arg0: i32) -> (i32, i32) {
    %c0_i32 = arith.constant 0 : i32
    %c0_i32_0 = arith.constant 0 : i32
    %c0_i32_1 = arith.constant 0 : i32
    return %c0_i32, %c0_i32_0 : i32, i32
  }
  func.func @transform_2(%arg0: i32) -> (i32, i32, i32) {
    %c0_i32 = arith.constant 0 : i32
    %c0_i32_0 = arith.constant 0 : i32
    %c0_i32_1 = arith.constant 0 : i32
    return %arg0, %c0_i32, %c0_i32_0 : i32, i32, i32
  }
}

module attributes {stable_mosaic.version = 11 : i64} {
  func.func @_classifier_kernel(%arg0: i32, %arg1: i32, %arg2: memref<2x2048xbf16, #tpu.memory_space<vmem>>, %arg3: memref<2x32xf32, #tpu.memory_space<vmem>>, %arg4: memref<2048x128xbf16, #tpu.memory_space<vmem>>, %arg5: memref<32x128xbf16, #tpu.memory_space<vmem>>, %arg6: memref<1x128xf32, #tpu.memory_space<vmem>>, %arg7: memref<2x128xf32, #tpu.memory_space<vmem>>, %arg8: memref<2x128xf32, #tpu.memory_space<vmem>>) attributes {dimension_semantics = [#tpu.dimension_semantics<parallel>, #tpu.dimension_semantics<arbitrary>], iteration_bounds = array<i64: 1, 1>, scalar_prefetch = 0 : i64, scratch_operands = 1 : i64, tpu.core_type = #tpu.core_type<tc>, window_params = [{transform_indices = @transform_0, window_bounds = array<i64: 2, 2048>}, {pipeline_mode = #tpu.pipeline_mode<synchronous>, transform_indices = @transform_1, window_bounds = array<i64: 2, 32>}, {transform_indices = @transform_2, window_bounds = array<i64: 2048, 128>}, {transform_indices = @transform_3, window_bounds = array<i64: 32, 128>}, {transform_indices = @transform_4, window_bounds = array<i64: 1, 128>}, {transform_indices = @transform_5, window_bounds = array<i64: 2, 128>}]} {
    %c0_i32 = arith.constant 0 : i32
    %0 = arith.cmpi eq, %arg1, %c0_i32 : i32
    %1 = arith.extui %0 : i1 to i32
    %c0_i32_0 = arith.constant 0 : i32
    %2 = arith.cmpi ne, %1, %c0_i32_0 : i32
    scf.if %2 {
      %cst_10 = arith.constant 0.000000e+00 : f32
      %12 = vector.broadcast %cst_10 : f32 to vector<2x128xf32>
      %c0_11 = arith.constant 0 : index
      %c0_12 = arith.constant 0 : index
      %13 = vector.load %arg8[%c0_11, %c0_12] : memref<2x128xf32, #tpu.memory_space<vmem>>, vector<2x128xf32>
      tpu.vector_store %arg8[%c0_11, %c0_12], %12 {strides = array<i32>} : memref<2x128xf32, #tpu.memory_space<vmem>>, vector<2x128xf32>,
    } else {
    }
    %c0 = arith.constant 0 : index
    %c0_1 = arith.constant 0 : index
    %3 = vector.load %arg8[%c0, %c0_1] : memref<2x128xf32, #tpu.memory_space<vmem>>, vector<2x128xf32>
    %c0_2 = arith.constant 0 : index
    %c0_3 = arith.constant 0 : index
    %4 = vector.load %arg2[%c0_2, %c0_3] : memref<2x2048xbf16, #tpu.memory_space<vmem>>, vector<2x2048xbf16>
    %c0_4 = arith.constant 0 : index
    %c0_5 = arith.constant 0 : index
    %5 = vector.load %arg4[%c0_4, %c0_5] : memref<2048x128xbf16, #tpu.memory_space<vmem>>, vector<2048x128xbf16>
    %cst = arith.constant dense<0.000000e+00> : vector<2x128xf32>
    %6 = tpu.matmul %4, %5, %cst {dimension_numbers = #tpu.dot_dimension_numbers<[1], [0], [0], [1], [0, 0, 1, 1], [], []>} : vector<2x2048xbf16>, vector<2048x128xbf16>, vector<2x128xf32> -> vector<2x128xf32>
    %7 = arith.addf %3, %6 : vector<2x128xf32>
    %c0_6 = arith.constant 0 : index
    %c0_7 = arith.constant 0 : index
    %8 = vector.load %arg8[%c0_6, %c0_7] : memref<2x128xf32, #tpu.memory_space<vmem>>, vector<2x128xf32>
    tpu.vector_store %arg8[%c0_6, %c0_7], %7 {strides = array<i32>} : memref<2x128xf32, #tpu.memory_space<vmem>>, vector<2x128xf32>,
    %c0_i32_8 = arith.constant 0 : i32
    %9 = arith.cmpi eq, %arg1, %c0_i32_8 : i32
    %10 = arith.extui %9 : i1 to i32
    %c0_i32_9 = arith.constant 0 : i32
    %11 = arith.cmpi ne, %10, %c0_i32_9 : i32
    scf.if %11 {
      %c0_10 = arith.constant 0 : index
      %c0_11 = arith.constant 0 : index
      %12 = vector.load %arg3[%c0_10, %c0_11] : memref<2x32xf32, #tpu.memory_space<vmem>>, vector<2x32xf32>
      %13 = arith.mulf %12, %12 : vector<2x32xf32>
      %cst_12 = arith.constant dense<0.000000e+00> : vector<2xf32>
      %14 = vector.multi_reduction <add>, %13, %cst_12 [1] : vector<2x32xf32> to vector<2xf32>
      %15 = vector.shape_cast %14 : vector<2xf32> to vector<2x1xf32>
      %16 = math.sqrt %15 : vector<2x1xf32>
      %cst_13 = arith.constant 9.99999993E-9 : f32
      %17 = vector.broadcast %cst_13 : f32 to vector<2x1xf32>
      %18 = arith.addf %16, %17 : vector<2x1xf32>
      %cst_14 = arith.constant 1.000000e+00 : f32
      %19 = vector.broadcast %cst_14 : f32 to vector<2x1xf32>
      %20 = arith.divf %19, %18 : vector<2x1xf32>
      %21 = vector.broadcast %20 : vector<2x1xf32> to vector<2x32xf32>
      %22 = arith.mulf %12, %21 : vector<2x32xf32>
      %23 = arith.truncf %22 : vector<2x32xf32> to vector<2x32xbf16>
      %c0_15 = arith.constant 0 : index
      %c0_16 = arith.constant 0 : index
      %24 = vector.load %arg8[%c0_15, %c0_16] : memref<2x128xf32, #tpu.memory_space<vmem>>, vector<2x128xf32>
      %c0_17 = arith.constant 0 : index
      %c0_18 = arith.constant 0 : index
      %25 = vector.load %arg5[%c0_17, %c0_18] : memref<32x128xbf16, #tpu.memory_space<vmem>>, vector<32x128xbf16>
      %cst_19 = arith.constant dense<0.000000e+00> : vector<2x128xf32>
      %26 = tpu.matmul %23, %25, %cst_19 {dimension_numbers = #tpu.dot_dimension_numbers<[1], [0], [0], [1], [0, 0, 1, 1], [], []>} : vector<2x32xbf16>, vector<32x128xbf16>, vector<2x128xf32> -> vector<2x128xf32>
      %27 = arith.addf %24, %26 : vector<2x128xf32>
      %c0_20 = arith.constant 0 : index
      %c0_21 = arith.constant 0 : index
      %28 = vector.load %arg6[%c0_20, %c0_21] : memref<1x128xf32, #tpu.memory_space<vmem>>, vector<1x128xf32>
      %29 = vector.broadcast %28 : vector<1x128xf32> to vector<2x128xf32>
      %30 = arith.addf %27, %29 : vector<2x128xf32>
      %cst_22 = arith.constant 0.000000e+00 : f32
      %31 = vector.broadcast %cst_22 : f32 to vector<2x128xf32>
      %32 = arith.maximumf %30, %31 : vector<2x128xf32>
      %c0_23 = arith.constant 0 : index
      %c0_24 = arith.constant 0 : index
      %33 = vector.load %arg7[%c0_23, %c0_24] : memref<2x128xf32, #tpu.memory_space<vmem>>, vector<2x128xf32>
      tpu.vector_store %arg7[%c0_23, %c0_24], %32 {strides = array<i32>} : memref<2x128xf32, #tpu.memory_space<vmem>>, vector<2x128xf32>,
    } else {
    }
    return
  }
  func.func @transform_0(%arg0: i32, %arg1: i32) -> (i32, i32) {
    %c0_i32 = arith.constant 0 : i32
    %c0_i32_0 = arith.constant 0 : i32
    return %c0_i32, %arg1 : i32, i32
  }
  func.func @transform_1(%arg0: i32, %arg1: i32) -> (i32, i32) {
    %c0_i32 = arith.constant 0 : i32
    %c0_i32_0 = arith.constant 0 : i32
    %c0_i32_1 = arith.constant 0 : i32
    return %c0_i32, %c0_i32_0 : i32, i32
  }
  func.func @transform_2(%arg0: i32, %arg1: i32) -> (i32, i32) {
    %c0_i32 = arith.constant 0 : i32
    return %arg1, %arg0 : i32, i32
  }
  func.func @transform_3(%arg0: i32, %arg1: i32) -> (i32, i32) {
    %c0_i32 = arith.constant 0 : i32
    %c0_i32_0 = arith.constant 0 : i32
    return %c0_i32, %arg0 : i32, i32
  }
  func.func @transform_4(%arg0: i32, %arg1: i32) -> (i32, i32) {
    %c0_i32 = arith.constant 0 : i32
    %c0_i32_0 = arith.constant 0 : i32
    return %c0_i32, %arg0 : i32, i32
  }
  func.func @transform_5(%arg0: i32, %arg1: i32) -> (i32, i32) {
    %c0_i32 = arith.constant 0 : i32
    %c0_i32_0 = arith.constant 0 : i32
    return %c0_i32, %arg0 : i32, i32
  }
}

</mosaic_0001>

<bundles_post_ra>
// kernel: simple_net_forward.2
= control target key start
LH: loop header
LB: loop body
LE: loop exit
PB: predicated region body
PF: predicated region fallthrough
CT: control target
= control target key end

     0   :  { %s390_s9 = smov 0   ;;  %s452_s0 = inlined_call_operand.vmem [shape: f32[2,64,64], index: 0, kind: input, shape index: {}]   ;;  %s453_s1 = inlined_call_operand.vmem [shape: bf16[32,64], index: 1, kind: input, shape index: {}]   ;;  %s454_s2 = inlined_call_operand.vmem [shape: bf16[2,32,64], index: 2, kind: output, shape index: {}]  }
   0x1 LB: > { %s326_s10 = sadd.s32 4294967295, %s373_s9   ;;  %p330_p0 = scmp.ge.s32.totalorder %s373_s9, 1  ;;  %s373_s9 = sphi %s390_s9, %s12_s9  }
   0x2   : > { %p112_p1 = scmp.lt.s32.totalorder %s373_s9, 3 }
   0x4   : > { %p113_p2 = pnand %p330_p0, %p112_p1 }
   0x5   : > { %p134_p3 = scmp.lt.s32.totalorder (!%p113_p2), %s326_s10, 1 }
   0x6   : > { %116 = sbr.rel (%p113_p2) target bundleno = 241 (0xf1), region = 28 }
   0xb   : > { %s456_s10 = smov (!%p134_p3, %s326_s10), 1  ;;  %vm161_vm0 = vcmask 523264   ;;  %vm266_vm7 = vcmask 519168  }
   0xc   : > { %s347_s11 = sshll.u32 %s456_s10, 6  ;;  %s348_s19 = sshll.u32 %s456_s10, 4 }
   0xd   : > { %s138_s14 = scalar_lea.vmem %s452_s0, %s347_s11  ;;  %s143_s22 = scalar_lea.vmem %s454_s2, %s348_s19 }
   0xe   : > { %v404_v0 = vld [vmem:[%s138_s14] sm:$0xff]  ;;  %v406_v1 = vld [vmem:[%s138_s14 + $0x8] sm:$0xff]  ;;  %v408_v2 = vld [vmem:[%s138_s14 + $0x10] sm:$0xff] }
   0xf   : > { %v410_v3 = vld [vmem:[%s138_s14 + $0x18] sm:$0xff]  ;;  %v412_v4 = vld [vmem:[%s138_s14 + $0x20] sm:$0xff]  ;;  %v153_v5 = vmul.f32 %v404_v0, %v404_v0  ;;  %v154_v6 = vmul.f32 %v406_v1, %v406_v1  ;;  %v155_v7 = vmul.f32 %v408_v2, %v408_v2  ;;  %v150_v8 = vld [vmem:[%s138_s14 + $0x28] sm:$0xff] }
  0x10   : > { %v156_v9 = vmul.f32 %v410_v3, %v410_v3  ;;  %v157_v10 = vmul.f32 %v412_v4, %v412_v4  ;;  %v151_v13 = vld [vmem:[%s138_s14 + $0x30] sm:$0xff]  ;;  %v158_v16 = vmul.f32 %v150_v8, %v150_v8  ;;  %v152_v18 = vld [vmem:[%s138_s14 + $0x38] sm:$0xff] }
  0x11   : > { %v162_v11 = vsel %vm161_vm0, %v153_v5, 0.0  ;;  %v163_v12 = vsel %vm161_vm0, %v154_v6, 0.0  ;;  %v165_v15 = vsel %vm161_vm0, %v155_v7, 0.0  ;;  %v159_v20 = vmul.f32 %v151_v13, %v151_v13 }
  0x12   : > { %v164_v14 = vadd.f32 %v163_v12, %v162_v11  ;;  %v167_v17 = vsel %vm161_vm0, %v156_v9, 0.0  ;;  %v169_v21 = vsel %vm161_vm0, %v157_v10, 0.0  ;;  %v160_v23 = vmul.f32 %v152_v18, %v152_v18 }
  0x13   : > { %v171_v24 = vsel %vm161_vm0, %v158_v16, 0.0  ;;  %v173_v26 = vsel %vm161_vm0, %v159_v20, 0.0 }
  0x14   : > { %v166_v19 = vadd.f32 %v165_v15, %v164_v14  ;;  %v175_v28 = vsel %vm161_vm0, %v160_v23, 0.0 }
  0x16   : > { %v168_v22 = vadd.f32 %v167_v17, %v166_v19 }
  0x18   : > { %v170_v25 = vadd.f32 %v169_v21, %v168_v22 }
  0x1a   : > { %v172_v27 = vadd.f32 %v171_v24, %v170_v25 }
  0x1c   : > { %v174_v29 = vadd.f32 %v173_v26, %v172_v27 }
  0x1e   : > { %v176_v30 = vadd.f32 %v175_v28, %v174_v29 }
  0x20   : > { %v177_v31 = vrot.slane %v176_v30, 4 }
  0x22   : > { %v178_v32 = vadd.f32 %v177_v31, %v176_v30 }
  0x24   : > { %v179_v33 = vrot.slane %v178_v32, 2 }
  0x26   : > { %v180_v34 = vadd.f32 %v179_v33, %v178_v32 }
  0x28   : > { %v181_v35 = vrot.slane %v180_v34, 1 }
  0x2a   : > { %v182_v36 = vadd.f32 %v181_v35, %v180_v34 }
  0x2c   : > { %363 = vrsqrt.f32 %v182_v36  ;;  %vm190_vm1 = vcmp.eq.f32.partialorder %v182_v36, inf  ;;  %v193_v43 = vand.u32 2147483648, %v182_v36  ;;  %vm192_vm2 = vcmp.eq.f32.partialorder %v182_v36, 0.0 }
  0x32   : > { %v364_v37 = vpop.eup %363 }
  0x33   : > { %v184_v38 = vmul.f32 %v364_v37, %v182_v36 }
  0x35   : > { %v185_v39 = vmul.f32 %v364_v37, %v184_v38 }
  0x37   : > { %v186_v40 = vmul.f32 0.5, %v185_v39 }
  0x39   : > { %v187_v41 = vsub.f32 1.5, %v186_v40 }
  0x3b   : > { %v188_v42 = vmul.f32 %v364_v37, %v187_v41 }
  0x3d   : > { %v189_v44 = vmul.f32 %v188_v42, %v182_v36 }
  0x3f   : > { %v191_v45 = vsel %vm190_vm1, %v182_v36, %v189_v44 }
  0x40   : > { %v194_v46 = vsel %vm192_vm2, %v193_v43, %v191_v45 }
  0x41   : > { %v195_v47 = vadd.f32 1e-08, %v194_v46 }
  0x43   : > { %365 = vrcp.f32 %v195_v47  ;;  %v207_v50 = vand.u32 2147483648, %v195_v47  ;;  %vm201_vm3 = vweird.f32 %v195_v47  ;;  %v205_v52 = vand.u32 2147483647, %v195_v47 }
  0x45   : > { %v208_v54 = vor.u32 1.1754944e-38, %v207_v50  ;;  %vm206_vm6 = vcmp.eq.f32.partialorder %v205_v52, 8.507059e+37 }
  0x49   : > { %v366_v48 = vpop.eup %365 }
  0x4a   : > { %v197_v49 = vmul.f32 %v366_v48, %v195_v47  ;;  %vm202_vm4 = vweird.f32 %v366_v48 }
  0x4b   : > { %vm203_vm5 = vmor %vm201_vm3, %vm202_vm4 }
  0x4c   : > { %v198_v51 = vsub.f32 1.0, %v197_v49 }
  0x4e   : > { %v199_v53 = vmul.f32 %v366_v48, %v198_v51 }
  0x50   : > { %v200_v55 = vadd.f32 %v366_v48, %v199_v53 }
  0x52   : > { %v204_v56 = vsel %vm203_vm5, %v366_v48, %v200_v55 }
  0x53   : > { %v209_v57 = vsel %vm206_vm6, %v208_v54, %v204_v56 }
  0x54   : > { %v217_v58 = vmul.f32 %v209_v57, %v151_v13  ;;  %v218_v59 = vmul.f32 %v209_v57, %v152_v18  ;;  %v215_v60 = vmul.f32 %v209_v57, %v412_v4  ;;  %v216_v61 = vmul.f32 %v209_v57, %v150_v8  ;;  %v349_v8 = vld [vmem:[%s453_s1] sm:$0xff] }
  0x55   : > { %v213_v5 = vmul.f32 %v209_v57, %v408_v2  ;;  %v214_v6 = vmul.f32 %v209_v57, %v410_v3  ;;  %v211_v9 = vmul.f32 %v209_v57, %v404_v0  ;;  %v212_v10 = vmul.f32 %v209_v57, %v406_v1  ;;  %v350_v2 = vld [vmem:[%s453_s1 + $0x8] sm:$0xff] }
  0x56   : > { %v222_v62 = vpack.c.bf16 %v218_v59, %v217_v58  ;;  %v221_v63 = vpack.c.bf16 %v216_v61, %v215_v60 }
  0x57   : > { %v220_v7 = vpack.c.bf16 %v214_v6, %v213_v5  ;;  %v219_v4 = vpack.c.bf16 %v212_v10, %v211_v9 }
  0x58   : > { %247 = vmatpush.bf16.msra.mxu0 %v222_v62  ;;  %351 = vmatpush.bf16.msra.mxu1 %v222_v62 }
  0x5c   : > { %248 = vmatpush.bf16.msra.mxu0 %v221_v63  ;;  %352 = vmatpush.bf16.msra.mxu1 %v221_v63 }
  0x60   : > { %249 = vmatpush.bf16.msra.mxu0 %v220_v7  ;;  %353 = vmatpush.bf16.msra.mxu1 %v220_v7 }
  0x64   : > { %250 = vmatpush.bf16.msra.mxu0 %v219_v4  ;;  %354 = vmatpush.bf16.msra.mxu1 %v219_v4 }
  0x67   : > { %343 = vmatmul.msk.bf16.vlgmr.msra.gmra.mxu0 %vm161_vm0, %v349_v8  ;;  %344 = vmatmul.msk.bf16.vlgmr.msra.gmra.mxu1 %vm161_vm0, %v350_v2 }
  0xe4   : > { %v252_v0 = vpop.f32.mrf.mxu0  ;;  %v257_v1 = vpop.f32.mrf.mxu1 }
  0xe5   : > { %v262_v3 = vpack.c.bf16 %v252_v0, %v252_v0  ;;  %v264_v11 = vpack.c.bf16 %v257_v1, %v257_v1 }
  0xe7   : > { %267 = vst.msk [vmem:[%s143_s22] sm:$0xf] %vm266_vm7, %v262_v3 }
  0xe8   : > { %269 = vst.msk [vmem:[%s143_s22 + $0x8] sm:$0xf] %vm266_vm7, %v264_v11 }
  0xec   : > { %v254_v12 = vpop.f32.mrf.mxu0  ;;  %v259_v13 = vpop.f32.mrf.mxu1 }
  0xed   : > { %v263_v14 = vpack.c.bf16 %v254_v12, %v254_v12  ;;  %v265_v15 = vpack.c.bf16 %v259_v13, %v259_v13 }
  0xef   : > { %268 = vst.msk [vmem:[%s143_s22 + $0x4] sm:$0xf] %vm266_vm7, %v263_v14 }
  0xf0   : > { %270 = vst.msk [vmem:[%s143_s22 + $0xc] sm:$0xf] %vm266_vm7, %v265_v15 }
  0xf1 PF: > { %s12_s9 = sadd.s32 1, %s373_s9  }
  0xf2   : > { %p9_p4 = scmp.ge.s32.totalorder %s12_s9, 4  }
  0xf4   :  { %11 = sbr.rel (!%p9_p4) target bundleno = 1 (0x1), region = 58 }

// kernel: simple_net_forward.3
= control target key start
LH: loop header
LB: loop body
LE: loop exit
PB: predicated region body
PF: predicated region fallthrough
CT: control target
= control target key end

     0   :  { %10 = vsyncpa [#allocation4], 0  ;;  %s2087_s21 = smov [#allocation3]   ;;  %s2088_s23 = smov 64   ;;  %s2150_s0 = inlined_call_operand.vmem [shape: bf16[2,2048], index: 0, kind: input, shape index: {}]   ;;  %s2151_s1 = inlined_call_operand.vmem [shape: f32[2,32], index: 1, kind: input, shape index: {}]   ;;  %s2152_s2 = inlined_call_operand.hbm [shape: bf16[2048,128], index: 2, kind: input, shape index: {}]   ;;  %s2153_s3 = inlined_call_operand.vmem [shape: bf16[32,128], index: 3, kind: input, shape index: {}]   ;;  %s2154_s4 = inlined_call_operand.vmem [shape: f32[1,128], index: 4, kind: input, shape index: {}]   ;;  %s2155_s5 = inlined_call_operand.vmem [shape: f32[2,128], index: 5, kind: output, shape index: {}]  }
   0x1   :  { %s19_s20 = sshll.u32 %s2152_s2, 4  ;;  %s21_s22 = sshll.u32 %s2087_s21, 4  ;;  %s20_s20 = int_to_ptr.hbm [resolvable:$true] %s19_s20  ;;  %s22_s22 = int_to_ptr.vmem [resolvable:$true] %s21_s22 }
   0x2   :  { %s2089_s24 = smov 4  }
   0x3   :  { %27 = dma.hbm_to_vmem [thread:$0]  %s20_s20, 16384, %s22_s22, [#allocation4], %s2088_s23, %s2088_s23, %s2089_s24  }
   0x4   :  { %2085 = dma.done.wait [#allocation4], 16384  }
   0x5   :  { %2086 = vsyncadd [#allocation4], 4294950912  ;;  %v1929_v0 = vld [vmem:[#allocation3 + $0x38] sm:$0xff]  ;;  %v2127_v2 = vld [vmem:[%s2151_s1] sm:$0x3]  ;;  %vm1320_vm0 = vcmask 254976  }
   0x6   :  { %v1945_v1 = vld [vmem:[#allocation3 + $0xb8] sm:$0xff]  ;;  %v1319_v3 = vmul.f32 %v2127_v2, %v2127_v2  ;;  %1105 = vmatpush.bf16.msra.mxu0 %v1929_v0  ;;  %v1928_v6 = vld [vmem:[#allocation3 + $0x30] sm:$0xff]  ;;  %v1927_v11 = vld [vmem:[#allocation3 + $0x28] sm:$0xff]  ;;  %vm1371_vm7 = vcmask 261120  }
   0x7   :  { %v1937_v4 = vld [vmem:[#allocation3 + $0x78] sm:$0xff]  ;;  %1131 = vmatpush.bf16.msra.mxu2 %v1945_v1  ;;  %v1944_v7 = vld [vmem:[#allocation3 + $0xb0] sm:$0xff]  ;;  %v1943_v12 = vld [vmem:[#allocation3 + $0xa8] sm:$0xff] }
   0x8   :  { %v1953_v5 = vld [vmem:[#allocation3 + $0xf8] sm:$0xff]  ;;  %v1321_v8 = vsel %vm1320_vm0, %v1319_v3, 0.0  ;;  %1118 = vmatpush.bf16.msra.mxu1 %v1937_v4  ;;  %v1936_v9 = vld [vmem:[#allocation3 + $0x70] sm:$0xff]  ;;  %v1935_v13 = vld [vmem:[#allocation3 + $0x68] sm:$0xff] }
   0x9   :  { %1144 = vmatpush.bf16.msra.mxu3 %v1953_v5  ;;  %v1952_v10 = vld [vmem:[#allocation3 + $0xf0] sm:$0xff]  ;;  %1322 = vadd.xlane.f32.xlu0 %v1321_v8  ;;  %v1951_v14 = vld [vmem:[#allocation3 + $0xe8] sm:$0xff]  ;;  %v1926_v15 = vld [vmem:[#allocation3 + $0x20] sm:$0xff] }
   0xa   :  { %1106 = vmatpush.bf16.msra.mxu0 %v1928_v6  ;;  %v1942_v16 = vld [vmem:[#allocation3 + $0xa0] sm:$0xff]  ;;  %v1925_v19 = vld [vmem:[#allocation3 + $0x18] sm:$0xff]  ;;  %v1924_v23 = vld [vmem:[#allocation3 + $0x10] sm:$0xff] }
   0xb   :  { %1132 = vmatpush.bf16.msra.mxu2 %v1944_v7  ;;  %v1934_v17 = vld [vmem:[#allocation3 + $0x60] sm:$0xff]  ;;  %v1941_v20 = vld [vmem:[#allocation3 + $0x98] sm:$0xff]  ;;  %v1940_v24 = vld [vmem:[#allocation3 + $0x90] sm:$0xff] }
   0xc   :  { %1119 = vmatpush.bf16.msra.mxu1 %v1936_v9  ;;  %v1950_v18 = vld [vmem:[#allocation3 + $0xe0] sm:$0xff]  ;;  %v1933_v21 = vld [vmem:[#allocation3 + $0x58] sm:$0xff]  ;;  %v1932_v25 = vld [vmem:[#allocation3 + $0x50] sm:$0xff] }
   0xd   :  { %1145 = vmatpush.bf16.msra.mxu3 %v1952_v10  ;;  %v1949_v22 = vld [vmem:[#allocation3 + $0xd8] sm:$0xff]  ;;  %v1948_v26 = vld [vmem:[#allocation3 + $0xd0] sm:$0xff]  ;;  %v1923_v28 = vld [vmem:[#allocation3 + $0x8] sm:$0xff] }
   0xe   :  { %1107 = vmatpush.bf16.msra.mxu0 %v1927_v11  ;;  %v43_v27 = vld [vmem:[%s2150_s0] sm:$0xff]  ;;  %v1939_v29 = vld [vmem:[#allocation3 + $0x88] sm:$0xff]  ;;  %v1922_v32 = vld [vmem:[#allocation3] sm:$0xff] }
   0xf   :  { %1133 = vmatpush.bf16.msra.mxu2 %v1943_v12  ;;  %302 = vst [vmem:[#allocation1] ss:$9 sm:$0xff] %v43_v27  ;;  %v1931_v30 = vld [vmem:[#allocation3 + $0x48] sm:$0xff]  ;;  %v1938_v33 = vld [vmem:[#allocation3 + $0x80] sm:$0xff]  ;;  %v1961_v34 = vld [vmem:[#allocation3 + $0x138] sm:$0xff] }
  0x10   :  { %1120 = vmatpush.bf16.msra.mxu1 %v1935_v13  ;;  %v1947_v31 = vld [vmem:[#allocation3 + $0xc8] sm:$0xff]  ;;  %v1977_v35 = vld [vmem:[#allocation3 + $0x1b8] sm:$0xff]  ;;  %v1930_v36 = vld [vmem:[#allocation3 + $0x40] sm:$0xff] }
  0x11   :  { %1146 = vmatpush.bf16.msra.mxu3 %v1951_v14  ;;  %v1946_v37 = vld [vmem:[#allocation3 + $0xc0] sm:$0xff]  ;;  %v1969_v38 = vld [vmem:[#allocation3 + $0x178] sm:$0xff]  ;;  %v1960_v40 = vld [vmem:[#allocation3 + $0x130] sm:$0xff] }
  0x12   :  { %1108 = vmatpush.bf16.msra.mxu0 %v1926_v15  ;;  %v1985_v39 = vld [vmem:[#allocation3 + $0x1f8] sm:$0xff]  ;;  %v1976_v41 = vld [vmem:[#allocation3 + $0x1b0] sm:$0xff]  ;;  %v1959_v48 = vld [vmem:[#allocation3 + $0x128] sm:$0xff] }
  0x13   :  { %1134 = vmatpush.bf16.msra.mxu2 %v1942_v16  ;;  %v1968_v44 = vld [vmem:[#allocation3 + $0x170] sm:$0xff]  ;;  %v1975_v49 = vld [vmem:[#allocation3 + $0x1a8] sm:$0xff]  ;;  %v1958_v52 = vld [vmem:[#allocation3 + $0x120] sm:$0xff] }
  0x14   :  { %1121 = vmatpush.bf16.msra.mxu1 %v1934_v17  ;;  %v1984_v45 = vld [vmem:[#allocation3 + $0x1f0] sm:$0xff]  ;;  %v1967_v50 = vld [vmem:[#allocation3 + $0x168] sm:$0xff]  ;;  %v1974_v53 = vld [vmem:[#allocation3 + $0x1a0] sm:$0xff] }
  0x15   :  { %1147 = vmatpush.bf16.msra.mxu3 %v1950_v18  ;;  %v1983_v51 = vld [vmem:[#allocation3 + $0x1e8] sm:$0xff]  ;;  %v1966_v54 = vld [vmem:[#allocation3 + $0x160] sm:$0xff]  ;;  %v1957_v56 = vld [vmem:[#allocation3 + $0x118] sm:$0xff] }
  0x16   :  { %1109 = vmatpush.bf16.msra.mxu0 %v1925_v19  ;;  %v303_v42 = vld [vmem:[#allocation1] sm:$0xff]  ;;  %v305_v43 = vld [vmem:[#allocation1 + $0x12] sm:$0xff]  ;;  %v304_v46 = vld [vmem:[#allocation1 + $0x9] sm:$0xff] }
  0x17   :  { %1135 = vmatpush.bf16.msra.mxu2 %v1941_v20  ;;  %v306_v47 = vld [vmem:[#allocation1 + $0x1b] sm:$0xff]  ;;  %v1982_v55 = vld [vmem:[#allocation3 + $0x1e0] sm:$0xff]  ;;  %v1955_v0 = vld [vmem:[#allocation3 + $0x108] sm:$0xff] }
  0x18   :  { %1122 = vmatpush.bf16.msra.mxu1 %v1933_v21  ;;  %v1973_v57 = vld [vmem:[#allocation3 + $0x198] sm:$0xff]  ;;  %v1956_v60 = vld [vmem:[#allocation3 + $0x110] sm:$0xff]  ;;  %v1971_v1 = vld [vmem:[#allocation3 + $0x188] sm:$0xff] }
  0x19   :  { %1148 = vmatpush.bf16.msra.mxu3 %v1949_v22  ;;  %v1965_v58 = vld [vmem:[#allocation3 + $0x158] sm:$0xff]  ;;  %v1972_v61 = vld [vmem:[#allocation3 + $0x190] sm:$0xff]  ;;  %v308_v7 = vld [vmem:[#allocation1 + $0x2d] sm:$0xff] }
  0x1a   :  { %1110 = vmatpush.bf16.msra.mxu0 %v1924_v23  ;;  %v1981_v59 = vld [vmem:[#allocation3 + $0x1d8] sm:$0xff]  ;;  %v1964_v62 = vld [vmem:[#allocation3 + $0x150] sm:$0xff]  ;;  %v1963_v8 = vld [vmem:[#allocation3 + $0x148] sm:$0xff] }
  0x1b   :  { %1136 = vmatpush.bf16.msra.mxu2 %v1940_v24  ;;  %v1980_v63 = vld [vmem:[#allocation3 + $0x1d0] sm:$0xff]  ;;  %v307_v4 = vld [vmem:[#allocation1 + $0x24] sm:$0xff]  ;;  %v1979_v9 = vld [vmem:[#allocation3 + $0x1c8] sm:$0xff] }
  0x1c   :  { %1123 = vmatpush.bf16.msra.mxu1 %v1932_v25  ;;  %v309_v3 = vld [vmem:[#allocation1 + $0x36] sm:$0xff]  ;;  %v310_v5 = vld [vmem:[#allocation1 + $0x3f] sm:$0xff]  ;;  %v44_v6 = vld [vmem:[%s2150_s0 + $0x8] sm:$0xff] }
  0x1d   :  { %1149 = vmatpush.bf16.msra.mxu3 %v1948_v26  ;;  %312 = vst [vmem:[#allocation1] ss:$9 sm:$0xff] %v44_v6  ;;  %v1954_v10 = vld [vmem:[#allocation3 + $0x100] sm:$0xff]  ;;  %v1993_v12 = vld [vmem:[#allocation3 + $0x238] sm:$0xff]  ;;  %v1992_v18 = vld [vmem:[#allocation3 + $0x230] sm:$0xff] }
  0x1e   :  { %1111 = vmatpush.bf16.msra.mxu0 %v1923_v28  ;;  %v1970_v11 = vld [vmem:[#allocation3 + $0x180] sm:$0xff]  ;;  %v2009_v13 = vld [vmem:[#allocation3 + $0x2b8] sm:$0xff]  ;;  %v2008_v19 = vld [vmem:[#allocation3 + $0x2b0] sm:$0xff] }
  0x1f   :  { %1137 = vmatpush.bf16.msra.mxu2 %v1939_v29  ;;  %v1962_v14 = vld [vmem:[#allocation3 + $0x140] sm:$0xff]  ;;  %v2001_v16 = vld [vmem:[#allocation3 + $0x278] sm:$0xff]  ;;  %v2000_v20 = vld [vmem:[#allocation3 + $0x270] sm:$0xff] }
  0x20   :  { %1124 = vmatpush.bf16.msra.mxu1 %v1931_v30  ;;  %v1978_v15 = vld [vmem:[#allocation3 + $0x1c0] sm:$0xff]  ;;  %v2017_v17 = vld [vmem:[#allocation3 + $0x2f8] sm:$0xff]  ;;  %v2016_v21 = vld [vmem:[#allocation3 + $0x2f0] sm:$0xff] }
  0x21   :  { %1150 = vmatpush.bf16.msra.mxu3 %v1947_v31  ;;  %v1991_v22 = vld [vmem:[#allocation3 + $0x228] sm:$0xff]  ;;  %v1990_v26 = vld [vmem:[#allocation3 + $0x220] sm:$0xff]  ;;  %v1989_v30 = vld [vmem:[#allocation3 + $0x218] sm:$0xff] }
  0x22   :  { %1112 = vmatpush.bf16.msra.mxu0 %v1922_v32  ;;  %v2007_v23 = vld [vmem:[#allocation3 + $0x2a8] sm:$0xff]  ;;  %v2006_v27 = vld [vmem:[#allocation3 + $0x2a0] sm:$0xff]  ;;  %v2005_v31 = vld [vmem:[#allocation3 + $0x298] sm:$0xff] }
  0x23   :  { %1138 = vmatpush.bf16.msra.mxu2 %v1938_v33  ;;  %v1999_v24 = vld [vmem:[#allocation3 + $0x268] sm:$0xff]  ;;  %v1998_v28 = vld [vmem:[#allocation3 + $0x260] sm:$0xff]  ;;  %v1997_v32 = vld [vmem:[#allocation3 + $0x258] sm:$0xff] }
  0x24   :  { %1125 = vmatpush.bf16.msra.mxu1 %v1930_v36  ;;  %v2015_v25 = vld [vmem:[#allocation3 + $0x2e8] sm:$0xff]  ;;  %v2014_v29 = vld [vmem:[#allocation3 + $0x2e0] sm:$0xff]  ;;  %v2013_v33 = vld [vmem:[#allocation3 + $0x2d8] sm:$0xff] }
  0x25   :  { %1151 = vmatpush.bf16.msra.mxu3 %v1946_v37  ;;  %1113 = vmatmul.bf16.vlgmr.msra.gmra.mxu0 %v303_v42  ;;  %v1996_v36 = vld [vmem:[#allocation3 + $0x250] sm:$0xff]  ;;  %v1986_v42 = vld [vmem:[#allocation3 + $0x200] sm:$0xff]  ;;  %v2045_v6 = vld [vmem:[#allocation3 + $0x3d8] sm:$0xff] }
  0x26   :  { %1157 = vmatpush.bf16.msrb.mxu0 %v1961_v34  ;;  %1139 = vmatmul.bf16.vlgmr.msra.gmra.mxu2 %v305_v43  ;;  %v1988_v34 = vld [vmem:[#allocation3 + $0x210] sm:$0xff]  ;;  %v2002_v43 = vld [vmem:[#allocation3 + $0x280] sm:$0xff] }
  0x27   :  { %1183 = vmatpush.bf16.msrb.mxu2 %v1977_v35  ;;  %1126 = vmatmul.bf16.vlgmr.msra.gmra.mxu1 %v304_v46  ;;  %v2004_v35 = vld [vmem:[#allocation3 + $0x290] sm:$0xff]  ;;  %v1994_v46 = vld [vmem:[#allocation3 + $0x240] sm:$0xff] }
  0x28   :  { %1170 = vmatpush.bf16.msrb.mxu1 %v1969_v38  ;;  %1152 = vmatmul.bf16.vlgmr.msra.gmra.mxu3 %v306_v47  ;;  %v2012_v37 = vld [vmem:[#allocation3 + $0x2d0] sm:$0xff]  ;;  %v1987_v38 = vld [vmem:[#allocation3 + $0x208] sm:$0xff]  ;;  %v2010_v47 = vld [vmem:[#allocation3 + $0x2c0] sm:$0xff] }
  0x29   :  { %1196 = vmatpush.bf16.msrb.mxu3 %v1985_v39  ;;  %v2003_v39 = vld [vmem:[#allocation3 + $0x288] sm:$0xff] }
  0x2a   :  { %1158 = vmatpush.bf16.msrb.mxu0 %v1960_v40  ;;  %v1995_v40 = vld [vmem:[#allocation3 + $0x248] sm:$0xff] }
  0x2b   :  { %1184 = vmatpush.bf16.msrb.mxu2 %v1976_v41  ;;  %v2011_v41 = vld [vmem:[#allocation3 + $0x2c8] sm:$0xff] }
  0x2c   :  { %1171 = vmatpush.bf16.msrb.mxu1 %v1968_v44  ;;  %v2025_v44 = vld [vmem:[#allocation3 + $0x338] sm:$0xff] }
  0x2d   :  { %1197 = vmatpush.bf16.msrb.mxu3 %v1984_v45  ;;  %v2041_v45 = vld [vmem:[#allocation3 + $0x3b8] sm:$0xff] }
  0x2e   :  { %1159 = vmatpush.bf16.msrb.mxu0 %v1959_v48  ;;  %v2033_v48 = vld [vmem:[#allocation3 + $0x378] sm:$0xff] }
  0x2f   :  { %1185 = vmatpush.bf16.msrb.mxu2 %v1975_v49  ;;  %v2049_v49 = vld [vmem:[#allocation3 + $0x3f8] sm:$0xff] }
  0x30   :  { %1172 = vmatpush.bf16.msrb.mxu1 %v1967_v50  ;;  %v2024_v50 = vld [vmem:[#allocation3 + $0x330] sm:$0xff] }
  0x31   :  { %1198 = vmatpush.bf16.msrb.mxu3 %v1983_v51  ;;  %v2040_v51 = vld [vmem:[#allocation3 + $0x3b0] sm:$0xff] }
  0x32   :  { %1160 = vmatpush.bf16.msrb.mxu0 %v1958_v52  ;;  %v315_v52 = vld [vmem:[#allocation1 + $0x12] sm:$0xff] }
  0x33   :  { %1186 = vmatpush.bf16.msrb.mxu2 %v1974_v53  ;;  %v313_v53 = vld [vmem:[#allocation1] sm:$0xff] }
  0x34   :  { %1173 = vmatpush.bf16.msrb.mxu1 %v1966_v54  ;;  %v2032_v54 = vld [vmem:[#allocation3 + $0x370] sm:$0xff] }
  0x35   :  { %1199 = vmatpush.bf16.msrb.mxu3 %v1982_v55  ;;  %v2048_v55 = vld [vmem:[#allocation3 + $0x3f0] sm:$0xff] }
  0x36   :  { %1161 = vmatpush.bf16.msrb.mxu0 %v1957_v56  ;;  %v316_v56 = vld [vmem:[#allocation1 + $0x1b] sm:$0xff] }
  0x37   :  { %1187 = vmatpush.bf16.msrb.mxu2 %v1973_v57  ;;  %v314_v57 = vld [vmem:[#allocation1 + $0x9] sm:$0xff] }
  0x38   :  { %1174 = vmatpush.bf16.msrb.mxu1 %v1965_v58  ;;  %v2023_v58 = vld [vmem:[#allocation3 + $0x328] sm:$0xff] }
  0x39   :  { %1200 = vmatpush.bf16.msrb.mxu3 %v1981_v59  ;;  %v2039_v59 = vld [vmem:[#allocation3 + $0x3a8] sm:$0xff] }
  0x3a   :  { %1162 = vmatpush.bf16.msrb.mxu0 %v1956_v60  ;;  %v2031_v60 = vld [vmem:[#allocation3 + $0x368] sm:$0xff] }
  0x3b   :  { %1188 = vmatpush.bf16.msrb.mxu2 %v1972_v61  ;;  %v2047_v61 = vld [vmem:[#allocation3 + $0x3e8] sm:$0xff] }
  0x3c   :  { %1175 = vmatpush.bf16.msrb.mxu1 %v1964_v62  ;;  %v2022_v62 = vld [vmem:[#allocation3 + $0x320] sm:$0xff] }
  0x3d   :  { %1201 = vmatpush.bf16.msrb.mxu3 %v1980_v63  ;;  %v2038_v63 = vld [vmem:[#allocation3 + $0x3a0] sm:$0xff] }
  0x3e   :  { %1163 = vmatpush.bf16.msrb.mxu0 %v1955_v0  ;;  %v2030_v0 = vld [vmem:[#allocation3 + $0x360] sm:$0xff] }
  0x3f   :  { %1189 = vmatpush.bf16.msrb.mxu2 %v1971_v1  ;;  %v2046_v1 = vld [vmem:[#allocation3 + $0x3e0] sm:$0xff] }
  0x40   :  { %1176 = vmatpush.bf16.msrb.mxu1 %v1963_v8  ;;  %v2036_v8 = vld [vmem:[#allocation3 + $0x390] sm:$0xff] }
  0x41   :  { %1202 = vmatpush.bf16.msrb.mxu3 %v1979_v9  ;;  %v2028_v9 = vld [vmem:[#allocation3 + $0x350] sm:$0xff] }
  0x42   :  { %1164 = vmatpush.bf16.msrb.mxu0 %v1954_v10  ;;  %v2044_v10 = vld [vmem:[#allocation3 + $0x3d0] sm:$0xff] }
  0x43   :  { %1190 = vmatpush.bf16.msrb.mxu2 %v1970_v11  ;;  %v2019_v11 = vld [vmem:[#allocation3 + $0x308] sm:$0xff] }
  0x44   :  { %1177 = vmatpush.bf16.msrb.mxu1 %v1962_v14  ;;  %v2043_v14 = vld [vmem:[#allocation3 + $0x3c8] sm:$0xff] }
  0x45   :  { %1203 = vmatpush.bf16.msrb.mxu3 %v1978_v15  ;;  %1165 = vmatmul.bf16.vlgmr.msrb.gmra.mxu0 %v307_v4  ;;  %v2037_v4 = vld [vmem:[#allocation3 + $0x398] sm:$0xff]  ;;  %v2018_v15 = vld [vmem:[#allocation3 + $0x300] sm:$0xff] }
  0x46   :  { %1209 = vmatpush.bf16.msra.mxu0 %v1993_v12  ;;  %1191 = vmatmul.bf16.vlgmr.msrb.gmra.mxu2 %v309_v3  ;;  %v2021_v3 = vld [vmem:[#allocation3 + $0x318] sm:$0xff]  ;;  %v2035_v12 = vld [vmem:[#allocation3 + $0x388] sm:$0xff] }
  0x47   :  { %1235 = vmatpush.bf16.msra.mxu2 %v2009_v13  ;;  %1178 = vmatmul.bf16.vlgmr.msrb.gmra.mxu1 %v308_v7  ;;  %v2020_v7 = vld [vmem:[#allocation3 + $0x310] sm:$0xff]  ;;  %v2027_v13 = vld [vmem:[#allocation3 + $0x348] sm:$0xff] }
  0x48   :  { %1222 = vmatpush.bf16.msra.mxu1 %v2001_v16  ;;  %1204 = vmatmul.bf16.vlgmr.msrb.gmra.mxu3 %v310_v5  ;;  %v2029_v5 = vld [vmem:[#allocation3 + $0x358] sm:$0xff]  ;;  %v2034_v16 = vld [vmem:[#allocation3 + $0x380] sm:$0xff] }
  0x49   :  { %1248 = vmatpush.bf16.msra.mxu3 %v2017_v17  ;;  %v2051_v17 = vld [vmem:[%s2153_s3 + $0x8] sm:$0xff] }
  0x4a   :  { %1210 = vmatpush.bf16.msra.mxu0 %v1992_v18  ;;  %v2026_v18 = vld [vmem:[#allocation3 + $0x340] sm:$0xff] }
  0x4b   :  { %1236 = vmatpush.bf16.msra.mxu2 %v2008_v19  ;;  %v2042_v19 = vld [vmem:[#allocation3 + $0x3c0] sm:$0xff] }
  0x4c   :  { %1223 = vmatpush.bf16.msra.mxu1 %v2000_v20  ;;  %v317_v20 = vld [vmem:[#allocation1 + $0x24] sm:$0xff] }
  0x4d   :  { %1249 = vmatpush.bf16.msra.mxu3 %v2016_v21  ;;  %v319_v21 = vld [vmem:[#allocation1 + $0x36] sm:$0xff] }
  0x4e   :  { %1211 = vmatpush.bf16.msra.mxu0 %v1991_v22 }
  0x4f   :  { %1237 = vmatpush.bf16.msra.mxu2 %v2007_v23  ;;  %v318_v23 = vld [vmem:[#allocation1 + $0x2d] sm:$0xff] }
  0x50   :  { %1224 = vmatpush.bf16.msra.mxu1 %v1999_v24  ;;  %v320_v24 = vld [vmem:[#allocation1 + $0x3f] sm:$0xff] }
  0x51   :  { %1250 = vmatpush.bf16.msra.mxu3 %v2015_v25  ;;  %v2050_v25 = vld [vmem:[%s2153_s3] sm:$0xff] }
  0x52   :  { %1212 = vmatpush.bf16.msra.mxu0 %v1990_v26 }
  0x53   :  { %1238 = vmatpush.bf16.msra.mxu2 %v2006_v27 }
  0x54   :  { %1225 = vmatpush.bf16.msra.mxu1 %v1998_v28 }
  0x55   :  { %1251 = vmatpush.bf16.msra.mxu3 %v2014_v29 }
  0x56   :  { %1213 = vmatpush.bf16.msra.mxu0 %v1989_v30 }
  0x57   :  { %1239 = vmatpush.bf16.msra.mxu2 %v2005_v31 }
  0x58   :  { %1226 = vmatpush.bf16.msra.mxu1 %v1997_v32 }
  0x59   :  { %1252 = vmatpush.bf16.msra.mxu3 %v2013_v33 }
  0x5a   :  { %1214 = vmatpush.bf16.msra.mxu0 %v1988_v34 }
  0x5b   :  { %1240 = vmatpush.bf16.msra.mxu2 %v2004_v35 }
  0x5c   :  { %1227 = vmatpush.bf16.msra.mxu1 %v1996_v36 }
  0x5d   :  { %1253 = vmatpush.bf16.msra.mxu3 %v2012_v37 }
  0x5e   :  { %1215 = vmatpush.bf16.msra.mxu0 %v1987_v38 }
  0x5f   :  { %1241 = vmatpush.bf16.msra.mxu2 %v2003_v39 }
  0x60   :  { %1228 = vmatpush.bf16.msra.mxu1 %v1995_v40 }
  0x61   :  { %1254 = vmatpush.bf16.msra.mxu3 %v2011_v41 }
  0x62   :  { %1216 = vmatpush.bf16.msra.mxu0 %v1986_v42 }
  0x63   :  { %1242 = vmatpush.bf16.msra.mxu2 %v2002_v43 }
  0x64   :  { %1229 = vmatpush.bf16.msra.mxu1 %v1994_v46 }
  0x65   :  { %1255 = vmatpush.bf16.msra.mxu3 %v2010_v47  ;;  %1217 = vmatmul.bf16.vlgmr.msra.gmra.mxu0 %v313_v53 }
  0x66   :  { %1261 = vmatpush.bf16.msrb.mxu0 %v2025_v44  ;;  %1243 = vmatmul.bf16.vlgmr.msra.gmra.mxu2 %v315_v52 }
  0x67   :  { %1287 = vmatpush.bf16.msrb.mxu2 %v2041_v45  ;;  %1230 = vmatmul.bf16.vlgmr.msra.gmra.mxu1 %v314_v57 }
  0x68   :  { %1274 = vmatpush.bf16.msrb.mxu1 %v2033_v48  ;;  %1256 = vmatmul.bf16.vlgmr.msra.gmra.mxu3 %v316_v56 }
  0x69   :  { %1300 = vmatpush.bf16.msrb.mxu3 %v2049_v49 }
  0x6a   :  { %1262 = vmatpush.bf16.msrb.mxu0 %v2024_v50 }
  0x6b   :  { %1288 = vmatpush.bf16.msrb.mxu2 %v2040_v51 }
  0x6c   :  { %1275 = vmatpush.bf16.msrb.mxu1 %v2032_v54 }
  0x6d   :  { %1301 = vmatpush.bf16.msrb.mxu3 %v2048_v55 }
  0x6e   :  { %1263 = vmatpush.bf16.msrb.mxu0 %v2023_v58 }
  0x6f   :  { %1289 = vmatpush.bf16.msrb.mxu2 %v2039_v59 }
  0x70   :  { %1276 = vmatpush.bf16.msrb.mxu1 %v2031_v60 }
  0x71   :  { %1302 = vmatpush.bf16.msrb.mxu3 %v2047_v61 }
  0x72   :  { %1264 = vmatpush.bf16.msrb.mxu0 %v2022_v62 }
  0x73   :  { %1290 = vmatpush.bf16.msrb.mxu2 %v2038_v63 }
  0x74   :  { %1277 = vmatpush.bf16.msrb.mxu1 %v2030_v0 }
  0x75   :  { %1303 = vmatpush.bf16.msrb.mxu3 %v2046_v1 }
  0x76   :  { %1265 = vmatpush.bf16.msrb.mxu0 %v2021_v3 }
  0x77   :  { %1291 = vmatpush.bf16.msrb.mxu2 %v2037_v4 }
  0x78   :  { %1278 = vmatpush.bf16.msrb.mxu1 %v2029_v5  ;;  %v2090_v5 = vmov 0.0  }
  0x79   :  { %1304 = vmatpush.bf16.msrb.mxu3 %v2045_v6  ;;  %41 = vst [vmem:[#allocation2] sm:$0x3] %v2090_v5 }
  0x7a   :  { %1266 = vmatpush.bf16.msrb.mxu0 %v2020_v7 }
  0x7b   :  { %1292 = vmatpush.bf16.msrb.mxu2 %v2036_v8 }
  0x7c   :  { %1279 = vmatpush.bf16.msrb.mxu1 %v2028_v9  ;;  %v1323_v22 = vpop.xlane.xlu0 %1322 }
  0x7d   :  { %1305 = vmatpush.bf16.msrb.mxu3 %v2044_v10  ;;  %2057 = vrsqrt.f32 %v1323_v22  ;;  %vm1331_vm1 = vcmp.eq.f32.partialorder %v1323_v22, inf  ;;  %v1334_v33 = vand.u32 2147483648, %v1323_v22  ;;  %vm1333_vm2 = vcmp.eq.f32.partialorder %v1323_v22, 0.0 }
  0x7e   :  { %1267 = vmatpush.bf16.msrb.mxu0 %v2019_v11 }
  0x7f   :  { %1293 = vmatpush.bf16.msrb.mxu2 %v2035_v12 }
  0x80   :  { %1280 = vmatpush.bf16.msrb.mxu1 %v2027_v13 }
  0x81   :  { %1306 = vmatpush.bf16.msrb.mxu3 %v2043_v14 }
  0x82   :  { %1268 = vmatpush.bf16.msrb.mxu0 %v2018_v15 }
  0x83   :  { %1294 = vmatpush.bf16.msrb.mxu2 %v2034_v16  ;;  %v2058_v26 = vpop.eup %2057 }
  0x84   :  { %1281 = vmatpush.bf16.msrb.mxu1 %v2026_v18  ;;  %v1325_v27 = vmul.f32 %v2058_v26, %v1323_v22 }
  0x85   :  { %1307 = vmatpush.bf16.msrb.mxu3 %v2042_v19  ;;  %1269 = vmatmul.bf16.vlgmr.msrb.gmra.mxu0 %v317_v20 }
  0x86   :  { %1381 = vmatpush.bf16.msra.mxu0 %v2051_v17  ;;  %1295 = vmatmul.bf16.vlgmr.msrb.gmra.mxu2 %v319_v21  ;;  %v1326_v28 = vmul.f32 %v2058_v26, %v1325_v27  ;;  %v42_v27 = vld [vmem:[#allocation2] sm:$0x3] }
  0x87   :  { %1282 = vmatmul.bf16.vlgmr.msrb.gmra.mxu1 %v318_v23 }
  0x88   :  { %1308 = vmatmul.bf16.vlgmr.msrb.gmra.mxu3 %v320_v24  ;;  %v1327_v29 = vmul.f32 0.5, %v1326_v28 }
  0x8a   :  { %1382 = vmatpush.bf16.msra.mxu0 %v2050_v25  ;;  %v1328_v30 = vsub.f32 1.5, %v1327_v29 }
  0x8c   :  { %v1329_v31 = vmul.f32 %v2058_v26, %v1328_v30 }
  0x8e   :  { %v1330_v32 = vmul.f32 %v1329_v31, %v1323_v22 }
  0x90   :  { %v1332_v34 = vsel %vm1331_vm1, %v1323_v22, %v1330_v32 }
  0x91   :  { %v1335_v35 = vsel %vm1333_vm2, %v1334_v33, %v1332_v34 }
  0x92   :  { %v1336_v36 = vadd.f32 1e-08, %v1335_v35  ;;  %v2056_v35 = vld [vmem:[%s2154_s4] ss:$0 sm:$0xff] }
  0x94   :  { %2059 = vrcp.f32 %v1336_v36  ;;  %v1348_v40 = vand.u32 2147483648, %v1336_v36  ;;  %v1346_v42 = vand.u32 2147483647, %v1336_v36  ;;  %vm1342_vm4 = vweird.f32 %v1336_v36 }
  0x96   :  { %v1349_v44 = vor.u32 1.1754944e-38, %v1348_v40  ;;  %vm1347_vm6 = vcmp.eq.f32.partialorder %v1346_v42, 8.507059e+37 }
  0x9a   :  { %v2060_v37 = vpop.eup %2059 }
  0x9b   :  { %v1338_v38 = vmul.f32 %v2060_v37, %v1336_v36  ;;  %vm1343_vm3 = vweird.f32 %v2060_v37 }
  0x9c   :  { %vm1344_vm5 = vmor %vm1342_vm4, %vm1343_vm3 }
  0x9d   :  { %v1339_v39 = vsub.f32 1.0, %v1338_v38 }
  0x9f   :  { %v1340_v41 = vmul.f32 %v2060_v37, %v1339_v39 }
  0xa1   :  { %v1341_v43 = vadd.f32 %v2060_v37, %v1340_v41 }
  0xa2   :  { %v1114_v47 = vpop.f32.mrf.mxu0 }
  0xa3   :  { %v1345_v45 = vsel %vm1344_vm5, %v2060_v37, %v1341_v43 }
  0xa4   :  { %v1350_v46 = vsel %vm1347_vm6, %v1349_v44, %v1345_v45  ;;  %v1127_v49 = vpop.f32.mrf.mxu1 }
  0xa5   :  { %v1352_v48 = vmul.f32 %v1350_v46, %v2127_v2  ;;  %v1128_v51 = vadd.f32 %v1127_v49, %v1114_v47 }
  0xa7   :  { %v1353_v50 = vpack.c.bf16 %v1352_v48, %v1352_v48 }
  0xa9   :  { %1921 = vmatmul.msk.bf16.vlgmr.msra.gmra.mxu0 %vm1371_vm7, %v1353_v50  ;;  %v1140_v52 = vpop.f32.mrf.mxu2 }
  0xaa   :  { %v1116_v54 = vpop.f32.mrf.mxu0  ;;  %v1141_v2 = vadd.f32 %v1140_v52, %v1128_v51 }
  0xab   :  { %v1153_v53 = vpop.f32.mrf.mxu3 }
  0xac   :  { %v1129_v55 = vpop.f32.mrf.mxu1  ;;  %v1154_v3 = vadd.f32 %v1153_v53, %v1141_v2 }
  0xb1   :  { %v1142_v56 = vpop.f32.mrf.mxu2 }
  0xb3   :  { %v1155_v57 = vpop.f32.mrf.mxu3 }
  0xc2   :  { %v1166_v58 = vpop.f32.mrf.mxu0 }
  0xc3   :  { %v1167_v4 = vadd.f32 %v1166_v58, %v1154_v3 }
  0xc4   :  { %v1179_v59 = vpop.f32.mrf.mxu1 }
  0xc5   :  { %v1180_v8 = vadd.f32 %v1179_v59, %v1167_v4 }
  0xc9   :  { %v1192_v60 = vpop.f32.mrf.mxu2 }
  0xca   :  { %v1168_v62 = vpop.f32.mrf.mxu0  ;;  %v1193_v10 = vadd.f32 %v1192_v60, %v1180_v8 }
  0xcb   :  { %v1205_v61 = vpop.f32.mrf.mxu3 }
  0xcc   :  { %v1181_v63 = vpop.f32.mrf.mxu1  ;;  %v1206_v14 = vadd.f32 %v1205_v61, %v1193_v10 }
  0xd1   :  { %v1194_v0 = vpop.f32.mrf.mxu2 }
  0xd3   :  { %v1207_v1 = vpop.f32.mrf.mxu3 }
  0xe2   :  { %v1218_v6 = vpop.f32.mrf.mxu0 }
  0xe3   :  { %v1219_v16 = vadd.f32 %v1218_v6, %v1206_v14 }
  0xe4   :  { %v1231_v7 = vpop.f32.mrf.mxu1 }
  0xe5   :  { %v1232_v18 = vadd.f32 %v1231_v7, %v1219_v16 }
  0xe9   :  { %v1244_v9 = vpop.f32.mrf.mxu2 }
  0xea   :  { %v1220_v12 = vpop.f32.mrf.mxu0  ;;  %v1245_v19 = vadd.f32 %v1244_v9, %v1232_v18 }
  0xeb   :  { %v1257_v11 = vpop.f32.mrf.mxu3 }
  0xec   :  { %v1233_v13 = vpop.f32.mrf.mxu1  ;;  %v1258_v20 = vadd.f32 %v1257_v11, %v1245_v19 }
  0xf1   :  { %v1246_v15 = vpop.f32.mrf.mxu2 }
  0xf3   :  { %v1259_v17 = vpop.f32.mrf.mxu3 }
 0x102   :  { %v1270_v21 = vpop.f32.mrf.mxu0 }
 0x103   :  { %v1271_v22 = vadd.f32 %v1270_v21, %v1258_v20 }
 0x104   :  { %v1283_v23 = vpop.f32.mrf.mxu1 }
 0x105   :  { %v1284_v24 = vadd.f32 %v1283_v23, %v1271_v22 }
 0x109   :  { %v1296_v25 = vpop.f32.mrf.mxu2 }
 0x10a   :  { %v1297_v26 = vadd.f32 %v1296_v25, %v1284_v24  ;;  %v1272_v29 = vpop.f32.mrf.mxu0 }
 0x10b   :  { %v1309_v28 = vpop.f32.mrf.mxu3 }
 0x10c   :  { %v1310_v30 = vadd.f32 %v1309_v28, %v1297_v26  ;;  %v1285_v31 = vpop.f32.mrf.mxu1 }
 0x10e   :  { %v1313_v32 = vadd.f32 %v1310_v30, %v42_v27 }
 0x110   :  { %1314 = vst [vmem:[#allocation2] sm:$0x3] %v1313_v32 }
 0x111   :  { %v1298_v33 = vpop.f32.mrf.mxu2 }
 0x113   :  { %v1311_v34 = vpop.f32.mrf.mxu3 }
 0x117   :  { %v1354_v36 = vld [vmem:[#allocation2] sm:$0x3] }
 0x126   :  { %v1384_v37 = vpop.f32.mrf.mxu0 }
 0x127   :  { %v1388_v38 = vadd.f32 %v1384_v37, %v1354_v36 }
 0x129   :  { %v1393_v39 = vadd.f32 %v2056_v35, %v1388_v38 }
 0x12b   :  { %v1394_v40 = vmax.f32 %v1393_v39, 0.0 }
 0x12d   :  { %1395 = vst [vmem:[%s2155_s5] sm:$0x3] %v1394_v40 }
 0x12e   :  { %v1386_v41 = vpop.f32.mrf.mxu0 }
 0x12f   :  { %1400 = vsyncpa [#allocation4], 1 }

</bundles_post_ra>
